<compile_context>
chip_gen: v6e
topology: v6e:2x2x1
jax: 0.10.0
libtpu: 0.0.40
codegen_flags: <defaults>
</compile_context>

<pallas_src>
import jax
import jax.numpy as jnp
from jax import lax
from jax.experimental import pallas as pl
from jax.experimental.pallas import tpu as pltpu

N_CLASSES = 10
N_FEATURES = 20


def logreg_kernel(x_ref, w_ref, b_ref, o_ref):
    # x_ref: (TILE_N, F), w_ref: (C, F), b_ref: (C, 1), o_ref: (C, TILE_N)
    x = x_ref[...].astype(jnp.float32)
    w = w_ref[...].astype(jnp.float32)
    b = b_ref[...].astype(jnp.float32)

    # (C, F) x (TILE_N, F) contracting on F -> logits (C, TILE_N): batch is on
    # the lane axis, so every downstream vector op is lane-dense.
    logits = lax.dot_general(
        w, x, (((1,), (1,)), ((), ())), preferred_element_type=jnp.float32
    ) + b

    # Numerically-stable log_softmax along the class axis (axis 0, 10 sublanes).
    m = jnp.max(logits, axis=0, keepdims=True)
    shifted = logits - m
    lse = jnp.log(jnp.sum(jnp.exp(shifted), axis=0, keepdims=True))
    o_ref[...] = (shifted - lse).astype(o_ref.dtype)


def logreg_forward(x, weight, bias, *, tile_n: int = 32768):
    """x: (N, ...) ; weight: (C, F) (PyTorch layout); bias: (C,). Returns (N, C)."""
    n = x.shape[0]
    x2d = x.reshape(n, -1).astype(jnp.float32)      # mimic x.view(n, -1)
    w = weight.astype(jnp.float32)                  # (C, F) used directly, no transpose
    b2d = bias.reshape(-1, 1).astype(jnp.float32)   # (C, 1) broadcast over lanes in-kernel

    if n <= tile_n:
        # Single block: block dims equal the full array dims, so no (8, 128)
        # divisibility requirement and no ragged handling needed.
        tile = n
    else:
        # Tiled path: the transposed output's lane dim is the batch tile, so it
        # must be a multiple of 128 (which also satisfies the 8-sublane rule
        # for the x block).
        tile = max((tile_n // 128) * 128, 128)

    grid = (pl.cdiv(n, tile),)

    # Double-buffered x tile + out tile (+ resident weight/bias, negligible).
    vmem_needed = 2 * tile * (N_FEATURES + N_CLASSES) * 4 + (2 << 20)

    out_t = pl.pallas_call(
        logreg_kernel,
        out_shape=jax.ShapeDtypeStruct((N_CLASSES, n), jnp.float32),
        grid=grid,
        in_specs=[
            # x: tiled over batch (sublane axis), full feature width.
            pl.BlockSpec((tile, N_FEATURES), lambda i: (i, 0)),
            # weight / bias: constant index_map -> resident in VMEM across steps.
            pl.BlockSpec((N_CLASSES, N_FEATURES), lambda i: (0, 0)),
            pl.BlockSpec((N_CLASSES, 1), lambda i: (0, 0)),
        ],
        # Lane-dense output: (C, tile) blocks tiled along the lane (batch) axis.
        out_specs=pl.BlockSpec((N_CLASSES, tile), lambda i: (0, i)),
        compiler_params=pltpu.CompilerParams(
            dimension_semantics=("parallel",),  # shards batch grid across 2 TCs on v7x
            vmem_limit_bytes=max(vmem_needed, 32 * 1024 * 1024),
        ),
    )(x2d, w, b2d)

    # Small (10, N) transpose outside the hot path to match nn.Module semantics.
    return out_t.T


def init_params(key):
    # Deterministic init mirroring nn.Linear's default uniform(-1/sqrt(F), 1/sqrt(F)).
    kw, kb = jax.random.split(key)
    bound = 1.0 / jnp.sqrt(jnp.float32(N_FEATURES))
    weight = jax.random.uniform(
        kw, (N_CLASSES, N_FEATURES), jnp.float32, minval=-bound, maxval=bound
    )
    bias = jax.random.uniform(
        kb, (N_CLASSES,), jnp.float32, minval=-bound, maxval=bound
    )
    return weight, bias


if __name__ == "__main__":
    key = jax.random.PRNGKey(0)
    kx, kp = jax.random.split(key)
    weight, bias = init_params(kp)

    # Small shape consistent with the module: batch=8, features=20.
    batch = 8
    x = jax.random.normal(kx, (batch, N_FEATURES), jnp.float32)
    out = logreg_forward(x, weight, bias)
    jax.block_until_ready(out)

    ref = jax.nn.log_softmax(x @ weight.T + bias, axis=1)
    assert out.shape == (batch, N_CLASSES)
    assert jnp.allclose(out, ref, atol=1e-5), "mismatch vs reference (small batch)"

    # Exercise the tiled path: grid > 1 and a batch that is NOT a multiple of
    # the tile (ragged last block handled by Pallas masking, no pad/slice copies).
    batch2 = 300
    x2 = jax.random.normal(kx, (batch2, N_FEATURES), jnp.float32)
    out2 = logreg_forward(x2, weight, bias, tile_n=128)
    jax.block_until_ready(out2)

    ref2 = jax.nn.log_softmax(x2 @ weight.T + bias, axis=1)
    assert out2.shape == (batch2, N_CLASSES)
    assert jnp.allclose(out2, ref2, atol=1e-5), "mismatch vs reference (tiled/ragged batch)"

    print("KERNEL_OK")
</pallas_src>

<mosaic_0001>
module attributes {stable_mosaic.version = 11 : i64} {
  func.func @logreg_kernel(%arg0: i32, %arg1: memref<8x20xf32, #tpu.memory_space<vmem>>, %arg2: memref<10x20xf32, #tpu.memory_space<vmem>>, %arg3: memref<10x1xf32, #tpu.memory_space<vmem>>, %arg4: memref<10x8xf32, #tpu.memory_space<vmem>>) attributes {dimension_semantics = [#tpu.dimension_semantics<parallel>], iteration_bounds = array<i64: 1>, scalar_prefetch = 0 : i64, scratch_operands = 0 : i64, tpu.core_type = #tpu.core_type<tc>, window_params = [{transform_indices = @transform_0, window_bounds = array<i64: 8, 20>}, {pipeline_mode = #tpu.pipeline_mode<synchronous>, transform_indices = @transform_1, window_bounds = array<i64: 10, 20>}, {pipeline_mode = #tpu.pipeline_mode<synchronous>, transform_indices = @transform_2, window_bounds = array<i64: 10, 1>}, {transform_indices = @transform_3, window_bounds = array<i64: 10, 8>}]} {
    %c0 = arith.constant 0 : index
    %c0_0 = arith.constant 0 : index
    %0 = vector.load %arg1[%c0, %c0_0] : memref<8x20xf32, #tpu.memory_space<vmem>>, vector<8x20xf32>
    %c0_1 = arith.constant 0 : index
    %c0_2 = arith.constant 0 : index
    %1 = vector.load %arg2[%c0_1, %c0_2] : memref<10x20xf32, #tpu.memory_space<vmem>>, vector<10x20xf32>
    %c0_3 = arith.constant 0 : index
    %c0_4 = arith.constant 0 : index
    %2 = vector.load %arg3[%c0_3, %c0_4] : memref<10x1xf32, #tpu.memory_space<vmem>>, vector<10x1xf32>
    %cst = arith.constant dense<0.000000e+00> : vector<10x8xf32>
    %3 = tpu.matmul %1, %0, %cst {dimension_numbers = #tpu.dot_dimension_numbers<[1], [1], [0], [0], [0, 0, 1, 0], [], []>} : vector<10x20xf32>, vector<8x20xf32>, vector<10x8xf32> -> vector<10x8xf32>
    %4 = vector.broadcast %2 : vector<10x1xf32> to vector<10x8xf32>
    %5 = arith.addf %3, %4 : vector<10x8xf32>
    %cst_5 = arith.constant dense<0xFF800000> : vector<8xf32>
    %6 = vector.multi_reduction <maximumf>, %5, %cst_5 [0] : vector<10x8xf32> to vector<8xf32>
    %7 = vector.shape_cast %6 : vector<8xf32> to vector<1x8xf32>
    %8 = vector.broadcast %7 : vector<1x8xf32> to vector<10x8xf32>
    %9 = arith.subf %5, %8 : vector<10x8xf32>
    %10 = math.exp %9 : vector<10x8xf32>
    %cst_6 = arith.constant dense<0.000000e+00> : vector<8xf32>
    %11 = vector.multi_reduction <add>, %10, %cst_6 [0] : vector<10x8xf32> to vector<8xf32>
    %12 = vector.shape_cast %11 : vector<8xf32> to vector<1x8xf32>
    %13 = math.log %12 : vector<1x8xf32>
    %14 = vector.broadcast %13 : vector<1x8xf32> to vector<10x8xf32>
    %15 = arith.subf %9, %14 : vector<10x8xf32>
    %c0_7 = arith.constant 0 : index
    %c0_8 = arith.constant 0 : index
    %16 = vector.load %arg4[%c0_7, %c0_8] : memref<10x8xf32, #tpu.memory_space<vmem>>, vector<10x8xf32>
    tpu.vector_store %arg4[%c0_7, %c0_8], %15 {strides = array<i32>} : memref<10x8xf32, #tpu.memory_space<vmem>>, vector<10x8xf32>,
    return
  }
  func.func @transform_0(%arg0: i32) -> (i32, i32) {
    %c0_i32 = arith.constant 0 : i32
    %c0_i32_0 = arith.constant 0 : i32
    return %arg0, %c0_i32 : i32, i32
  }
  func.func @transform_1(%arg0: i32) -> (i32, i32) {
    %c0_i32 = arith.constant 0 : i32
    %c0_i32_0 = arith.constant 0 : i32
    %c0_i32_1 = arith.constant 0 : i32
    return %c0_i32, %c0_i32_0 : i32, i32
  }
  func.func @transform_2(%arg0: i32) -> (i32, i32) {
    %c0_i32 = arith.constant 0 : i32
    %c0_i32_0 = arith.constant 0 : i32
    %c0_i32_1 = arith.constant 0 : i32
    return %c0_i32, %c0_i32_0 : i32, i32
  }
  func.func @transform_3(%arg0: i32) -> (i32, i32) {
    %c0_i32 = arith.constant 0 : i32
    %c0_i32_0 = arith.constant 0 : i32
    return %c0_i32, %arg0 : i32, i32
  }
}

</mosaic_0001>

<bundles_post_ra>
// kernel: tpu_custom_call.1
= control target key start
LH: loop header
LB: loop body
LE: loop exit
PB: predicated region body
PF: predicated region fallthrough
CT: control target
= control target key end

     0   :  { %8 = vsyncpa [#allocation3], 0  ;;  %s205_s12 = smov [#allocation2]   ;;  %s254_s0 = inlined_call_operand.hbm [shape: f32[8,20], index: 0, kind: input, shape index: {}]   ;;  %s255_s1 = inlined_call_operand.vmem [shape: f32[10,20], index: 1, kind: input, shape index: {}]   ;;  %s256_s2 = inlined_call_operand.vmem [shape: f32[10,1], index: 2, kind: input, shape index: {}]   ;;  %s257_s3 = inlined_call_operand.vmem [shape: f32[10,8], index: 3, kind: output, shape index: {}]  }
   0x1   :  { %s15_s13 = sshll.u32 %s205_s12, 4  ;;  %s16_s13 = int_to_ptr.vmem [resolvable:$true] %s15_s13 }
   0x2   :  { %s191_s14 = scalar_lea.vmem %s16_s13, 128  ;;  %p196_p1 = scmp.lt.s32.totalorder %s16_s13, %s16_s13 }
   0x3   :  { %p192_p0 = scmp.ne.s32.totalorder %s16_s13, %s191_s14  ;;  %p197_p2 = scmp.lt.s32.totalorder %s191_s14, %s191_s14 }
   0x5   :  { %p198_p3 = por %p197_p2, %p196_p1 }
   0x7   :  { %p199_p4 = pnand %p198_p3, %p192_p0 }
   0x9   :  { %202 = shalt.err (!%p199_p4)
}
   0xa   :  { %18 = dma.hbm_to_vmem [thread:$0]  %s254_s0, 128, %s16_s13, [#allocation3]  }
   0xb   :  { %203 = dma.done.wait [#allocation3], 128  }
   0xc   :  { %204 = vsyncadd [#allocation3], 4294967168  ;;  %v206_v0 = vmov 0   ;;  %vm41_vm0 = vcmask 162816   ;;  %v26_v1 = vld [vmem:[#allocation2] sm:$0xff]  ;;  %vm128_vm1 = vcmask 58368  }
   0xd   :  { %176 = vset.pattern.permute.xlu0 %v206_v0  ;;  %v27_v2 = vld [vmem:[%s255_s1] sm:$0xff]  ;;  %169 = vmatprep.subr.msk.mxu0 %vm41_vm0, %v26_v1  ;;  %v28_v4 = vld [vmem:[%s255_s1 + $0x8] sm:$0x3]  ;;  %vm126_vm2 = vcmask 64512  }
   0xe   :  { %171 = vmatprep.mubr.msk.f32.mxu0 %vm41_vm0, %v27_v2  ;;  %v29_v3 = vld [vmem:[%s256_s2] sm:$0xff]  ;;  %170 = vmatpush3.xpose.msk.msra.mxu0 %vm41_vm0, %v26_v1  ;;  %v30_v5 = vld [vmem:[%s256_s2 + $0x8] sm:$0x3] }
   0xf   :  { %33 = vperm.xlu0 %176, %v29_v3  }
  0x11   :  { %172 = vmatmul.mubr.msk.f32.vlgmr.msra.gmra.mxu0 %vm41_vm0, %v28_v4 }
  0x13   :  { %38 = vperm.xlu0 %176, %v30_v5  }
  0x8a   :  { %v34_v6 = vpop.permute.xlu0 %33 }
  0x8e   :  { %v39_v7 = vpop.permute.xlu0 %38 }
  0xd1   :  { %v173_v8 = vpop.f32.mrf.mxu0 }
  0xd2   :  { %v123_v9 = vadd.f32 %v173_v8, %v39_v7 }
  0xd3   :  { %v117_v10 = vpop.f32.mrf.mxu0 }
  0xd4   :  { %v118_v11 = vadd.f32 %v117_v10, %v34_v6  ;;  %v129_v12 = vsel %vm128_vm1, %v123_v9, -inf }
  0xd6   :  { %v127_v13 = vsel %vm126_vm2, %v118_v11, -inf }
  0xd7   :  { %v130_v14 = vmax.f32 %v127_v13, %v129_v12 }
  0xd9   :  { %v131_v15 = vrot.slane %v130_v14, 4 }
  0xdb   :  { %v132_v16 = vmax.f32 %v130_v14, %v131_v15 }
  0xdd   :  { %v133_v17 = vrot.slane %v132_v16, 2 }
  0xdf   :  { %v134_v18 = vmax.f32 %v132_v16, %v133_v17 }
  0xe1   :  { %v135_v19 = vrot.slane %v134_v18, 1 }
  0xe3   :  { %v136_v20 = vmax.f32 %v134_v18, %v135_v19 }
  0xe5   :  { %v137_v21 = vsub.f32 %v118_v11, %v136_v20  ;;  %v138_v22 = vsub.f32 %v123_v9, %v136_v20 }
  0xe7   :  { %v139_v23 = vmul.f32 1.442695, %v137_v21  ;;  %v141_v24 = vmul.f32 1.442695, %v138_v22 }
  0xe9   :  { %177 = vpow2.f32 %v139_v23 }
  0xea   :  { %179 = vpow2.f32 %v141_v24 }
  0xf6   :  { %v178_v25 = vpop.eup %177 }
  0xf7   :  { %v180_v26 = vpop.eup %179  ;;  %v143_v27 = vsel %vm126_vm2, %v178_v25, 0.0 }
  0xf8   :  { %v144_v28 = vsel %vm128_vm1, %v180_v26, 0.0 }
  0xf9   :  { %v145_v29 = vadd.f32 %v144_v28, %v143_v27 }
  0xfb   :  { %v146_v30 = vrot.slane %v145_v29, 4 }
  0xfd   :  { %v147_v31 = vadd.f32 %v146_v30, %v145_v29 }
  0xff   :  { %v148_v32 = vrot.slane %v147_v31, 2 }
 0x101   :  { %v149_v33 = vadd.f32 %v148_v32, %v147_v31 }
 0x103   :  { %v150_v34 = vrot.slane %v149_v33, 1 }
 0x105   :  { %v151_v35 = vadd.f32 %v150_v34, %v149_v33 }
 0x107   :  { %181 = vlog2.f32 %v151_v35 }
 0x114   :  { %v182_v36 = vpop.eup %181 }
 0x115   :  { %v153_v37 = vmul.f32 0.6931472, %v182_v36 }
 0x117   :  { %v154_v38 = vsub.f32 %v137_v21, %v153_v37  ;;  %v155_v39 = vsub.f32 %v138_v22, %v153_v37 }
 0x119   :  { %156 = vst.msk [vmem:[%s257_s3] sm:$0xff] %vm126_vm2, %v154_v38 }
 0x11a   :  { %157 = vst.msk [vmem:[%s257_s3 + $0x8] sm:$0x3] %vm128_vm1, %v155_v39 }
 0x11b   :  { %162 = vsyncpa [#allocation3], 1 }

</bundles_post_ra>
